<compile_context>
chip_gen: v5e
topology: v5e:2x2
jax: 0.10.0
libtpu: 0.0.40
codegen_flags: <defaults>
</compile_context>

<pallas_src>
import functools

import jax
import jax.numpy as jnp
from jax.experimental import pallas as pl
from jax.experimental.pallas import tpu as pltpu


def _odeblock_kernel(x_ref, w1_ref, b1_ref, w2_ref, b2_ref, o_ref, *,
                     num_steps, dt, tanh_bf16):
    tile_b = x_ref.shape[0]
    H = w1_ref.shape[1]
    D = w2_ref.shape[1]

    x = x_ref[...]
    if x.dtype != jnp.float32:
        x = x.astype(jnp.float32)

    # Weights are cast to bf16 once per grid step; the MXU is native bf16 on
    # all generations (f32 matmul is multi-pass emulation at ~1/3 rate).
    w1 = w1_ref[...].astype(jnp.bfloat16)
    w2 = w2_ref[...].astype(jnp.bfloat16)
    # Hoist bias broadcasts out of the RK4 loop (done once, not per ode_func
    # call).  Biases stay f32: they are added to the f32 matmul accumulator.
    b1b = jnp.broadcast_to(b1_ref[...].astype(jnp.float32), (tile_b, H))
    b2b = jnp.broadcast_to(b2_ref[...].astype(jnp.float32), (tile_b, D))

    def ode_func(y):
        # dx/dt = W2 @ tanh(W1 @ x + b1) + b2   (autonomous MLP ODE func)
        # bf16 operands, f32 accumulation; state stays f32.
        pre = jnp.dot(y.astype(jnp.bfloat16), w1,
                      preferred_element_type=jnp.float32) + b1b
        if tanh_bf16:
            # v6e/v7x: bf16 EUP path, feeds the bf16 second matmul directly.
            h = jnp.tanh(pre.astype(jnp.bfloat16))
        else:
            # v5e: no bf16 VPU/EUP path — keep tanh in f32, cast only the
            # matmul operand.
            h = jnp.tanh(pre).astype(jnp.bfloat16)
        return jnp.dot(h, w2, preferred_element_type=jnp.float32) + b2b

    half_dt = 0.5 * dt
    sixth_dt = dt / 6.0

    def rk4_step(_, y):
        # Incremental accumulation: at most y, k, acc live at any point.
        k = ode_func(y)                  # k1
        acc = k
        k = ode_func(y + half_dt * k)    # k2
        acc = acc + 2.0 * k
        k = ode_func(y + half_dt * k)    # k3
        acc = acc + 2.0 * k
        k = ode_func(y + dt * k)         # k4
        return y + sixth_dt * (acc + k)

    # Full unroll only for a handful of steps; otherwise bounded unroll keeps
    # LLO visibility without code-size blowup (steps are strictly sequential).
    unroll = True if num_steps <= 4 else 2
    x = jax.lax.fori_loop(0, num_steps, rk4_step, x, unroll=unroll)
    o_ref[...] = x.astype(o_ref.dtype)


def _round_up(n, m):
    return ((n + m - 1) // m) * m


def _default_tanh_bf16():
    # bf16 tanh only where the EUP has a bf16 path (v6e / v7x).  v5e and older
    # keep tanh in f32.
    try:
        kind = jax.devices()[0].device_kind.lower()
    except Exception:  # pragma: no cover - CPU/interpret fallback
        return False
    for old in ("v2", "v3", "v4", "v5"):
        if old in kind:
            return False
    return True


def ode_block_forward(x, w1, b1, w2, b2, *, T=1, tile_b=256, tanh_bf16=None):
    """Pallas ODEBlock forward: integrate from t=0 to t=T, return state at T."""
    B, D = x.shape
    H = w1.shape[1]
    assert w1.shape == (D, H) and b1.shape == (1, H)
    assert w2.shape == (H, D) and b2.shape == (1, D)

    if tanh_bf16 is None:
        tanh_bf16 = _default_tanh_bf16()

    # Batch tile: multiple of 8 (sublane), capped at `tile_b` (256 fills the
    # v6e/v7x MXU M-stream and amortizes per-grid-step overhead; kept <=256 so
    # vreg spill traffic stays below the MXU bottleneck).
    tb = min(tile_b, _round_up(B, 8))
    # Ensure >=2 grid iterations when the batch is large enough to split, so
    # dimension_semantics=("parallel",) actually shards across the two
    # TensorCores on v7x (harmless single-TC chips just loop).
    if _round_up(B, tb) // tb < 2 and tb >= 256:
        tb = _round_up(tb // 2, 8)
    padded_b = _round_up(B, tb)
    if padded_b != B:
        x_in = jnp.pad(x, ((0, padded_b - B), (0, 0)))
    else:
        x_in = x
    grid = (padded_b // tb,)

    kernel = functools.partial(_odeblock_kernel, num_steps=T, dt=1.0,
                               tanh_bf16=bool(tanh_bf16))

    # Advisory cost hint: T RK4 steps * 4 ode_func calls * 2 matmuls of
    # (tb, D) x (D, H) / (tb, H) x (H, D) per tile, plus 4 tanh maps per step.
    flops = int(padded_b) * int(T) * 4 * (2 * D * H + 2 * H * D)
    transcendentals = int(padded_b) * int(T) * 4 * H
    bytes_accessed = 4 * (2 * padded_b * D + D * H + H * D + H + D)
    cost = pl.CostEstimate(flops=flops, transcendentals=transcendentals,
                           bytes_accessed=bytes_accessed)

    out = pl.pallas_call(
        kernel,
        out_shape=jax.ShapeDtypeStruct((padded_b, D), x.dtype),
        grid=grid,
        in_specs=[
            pl.BlockSpec((tb, D), lambda i: (i, 0)),   # x: tiled over batch
            pl.BlockSpec((D, H), lambda i: (0, 0)),    # w1: VMEM-resident
            pl.BlockSpec((1, H), lambda i: (0, 0)),    # b1: VMEM-resident
            pl.BlockSpec((H, D), lambda i: (0, 0)),    # w2: VMEM-resident
            pl.BlockSpec((1, D), lambda i: (0, 0)),    # b2: VMEM-resident
        ],
        out_specs=pl.BlockSpec((tb, D), lambda i: (i, 0)),
        compiler_params=pltpu.CompilerParams(
            dimension_semantics=("parallel",),
        ),
        cost_estimate=cost,
    )(x_in, w1, b1, w2, b2)

    if padded_b != B:
        out = out[:B]
    return out


def _reference_forward(x, w1, b1, w2, b2, *, T=1):
    # Pure-JAX f32 reference (same fixed-step RK4 semantics) for sanity check.
    def f(y):
        return jnp.tanh(y @ w1 + b1) @ w2 + b2

    dt = 1.0
    y = x.astype(jnp.float32)
    for _ in range(T):
        k1 = f(y)
        k2 = f(y + 0.5 * dt * k1)
        k3 = f(y + 0.5 * dt * k2)
        k4 = f(y + dt * k3)
        y = y + (dt / 6.0) * (k1 + 2.0 * k2 + 2.0 * k3 + k4)
    return y.astype(x.dtype)


if __name__ == "__main__":
    # NOTE: this is a small smoke-test shape.  Benchmark / tune tile_b with a
    # representative batch (B >= a few hundred); at B=8 the grid collapses to
    # one under-filled tile and per-call overhead dominates.
    B, D, H, T = 8, 128, 128, 2

    key = jax.random.PRNGKey(0)
    kx, k1, k2, k3, k4 = jax.random.split(key, 5)
    x = jax.random.normal(kx, (B, D), dtype=jnp.float32)
    # Deterministic synthetic "Linear" parameters (fan-in scaled), shapes per
    # the dense ODE func: Linear(D->H), Linear(H->D).
    w1 = jax.random.normal(k1, (D, H), dtype=jnp.float32) * (1.0 / jnp.sqrt(D))
    b1 = jax.random.normal(k2, (1, H), dtype=jnp.float32) * 0.01
    w2 = jax.random.normal(k3, (H, D), dtype=jnp.float32) * (1.0 / jnp.sqrt(H))
    b2 = jax.random.normal(k4, (1, D), dtype=jnp.float32) * 0.01

    out = ode_block_forward(x, w1, b1, w2, b2, T=T)
    out = jax.block_until_ready(out)

    ref = _reference_forward(x, w1, b1, w2, b2, T=T)
    assert out.shape == (B, D)
    # bf16 matmul operands compound a small error over T RK4 steps; validate
    # against the f32 reference with a correspondingly looser tolerance.
    assert jnp.allclose(out, ref, atol=1e-1, rtol=1e-1), (
        float(jnp.max(jnp.abs(out - ref))))

    print("KERNEL_OK")
</pallas_src>

<mosaic_0001>
module attributes {stable_mosaic.version = 11 : i64} {
  func.func @_odeblock_kernel(%arg0: i32, %arg1: memref<8x128xf32, #tpu.memory_space<vmem>>, %arg2: memref<128x128xf32, #tpu.memory_space<vmem>>, %arg3: memref<1x128xf32, #tpu.memory_space<vmem>>, %arg4: memref<128x128xf32, #tpu.memory_space<vmem>>, %arg5: memref<1x128xf32, #tpu.memory_space<vmem>>, %arg6: memref<8x128xf32, #tpu.memory_space<vmem>>) attributes {dimension_semantics = [#tpu.dimension_semantics<parallel>], iteration_bounds = array<i64: 1>, scalar_prefetch = 0 : i64, scratch_operands = 0 : i64, tpu.core_type = #tpu.core_type<tc>, window_params = [{transform_indices = @transform_0, window_bounds = array<i64: 8, 128>}, {pipeline_mode = #tpu.pipeline_mode<synchronous>, transform_indices = @transform_1, window_bounds = array<i64: 128, 128>}, {pipeline_mode = #tpu.pipeline_mode<synchronous>, transform_indices = @transform_2, window_bounds = array<i64: 1, 128>}, {pipeline_mode = #tpu.pipeline_mode<synchronous>, transform_indices = @transform_3, window_bounds = array<i64: 128, 128>}, {pipeline_mode = #tpu.pipeline_mode<synchronous>, transform_indices = @transform_4, window_bounds = array<i64: 1, 128>}, {transform_indices = @transform_5, window_bounds = array<i64: 8, 128>}]} {
    %c0 = arith.constant 0 : index
    %c0_0 = arith.constant 0 : index
    %0 = vector.load %arg1[%c0, %c0_0] : memref<8x128xf32, #tpu.memory_space<vmem>>, vector<8x128xf32>
    %c0_1 = arith.constant 0 : index
    %c0_2 = arith.constant 0 : index
    %1 = vector.load %arg2[%c0_1, %c0_2] : memref<128x128xf32, #tpu.memory_space<vmem>>, vector<128x128xf32>
    %2 = arith.truncf %1 : vector<128x128xf32> to vector<128x128xbf16>
    %c0_3 = arith.constant 0 : index
    %c0_4 = arith.constant 0 : index
    %3 = vector.load %arg4[%c0_3, %c0_4] : memref<128x128xf32, #tpu.memory_space<vmem>>, vector<128x128xf32>
    %4 = arith.truncf %3 : vector<128x128xf32> to vector<128x128xbf16>
    %c0_5 = arith.constant 0 : index
    %c0_6 = arith.constant 0 : index
    %5 = vector.load %arg3[%c0_5, %c0_6] : memref<1x128xf32, #tpu.memory_space<vmem>>, vector<1x128xf32>
    %6 = vector.shape_cast %5 : vector<1x128xf32> to vector<1x128xf32>
    %7 = vector.broadcast %6 : vector<1x128xf32> to vector<8x128xf32>
    %c0_7 = arith.constant 0 : index
    %c0_8 = arith.constant 0 : index
    %8 = vector.load %arg5[%c0_7, %c0_8] : memref<1x128xf32, #tpu.memory_space<vmem>>, vector<1x128xf32>
    %9 = vector.shape_cast %8 : vector<1x128xf32> to vector<1x128xf32>
    %10 = vector.broadcast %9 : vector<1x128xf32> to vector<8x128xf32>
    %c0_i32 = arith.constant 0 : i32
    %11 = arith.truncf %0 : vector<8x128xf32> to vector<8x128xbf16>
    %cst = arith.constant dense<0.000000e+00> : vector<8x128xf32>
    %12 = tpu.matmul %11, %2, %cst {dimension_numbers = #tpu.dot_dimension_numbers<[1], [0], [0], [1], [0, 0, 1, 1], [], []>} : vector<8x128xbf16>, vector<128x128xbf16>, vector<8x128xf32> -> vector<8x128xf32>
    %13 = arith.addf %12, %7 : vector<8x128xf32>
    %14 = arith.truncf %13 : vector<8x128xf32> to vector<8x128xbf16>
    %15 = math.tanh %14 : vector<8x128xbf16>
    %cst_9 = arith.constant dense<0.000000e+00> : vector<8x128xf32>
    %16 = tpu.matmul %15, %4, %cst_9 {dimension_numbers = #tpu.dot_dimension_numbers<[1], [0], [0], [1], [0, 0, 1, 1], [], []>} : vector<8x128xbf16>, vector<128x128xbf16>, vector<8x128xf32> -> vector<8x128xf32>
    %17 = arith.addf %16, %10 : vector<8x128xf32>
    %cst_10 = arith.constant 5.000000e-01 : f32
    %18 = vector.broadcast %cst_10 : f32 to vector<8x128xf32>
    %19 = arith.mulf %18, %17 : vector<8x128xf32>
    %20 = arith.addf %0, %19 : vector<8x128xf32>
    %21 = arith.truncf %20 : vector<8x128xf32> to vector<8x128xbf16>
    %cst_11 = arith.constant dense<0.000000e+00> : vector<8x128xf32>
    %22 = tpu.matmul %21, %2, %cst_11 {dimension_numbers = #tpu.dot_dimension_numbers<[1], [0], [0], [1], [0, 0, 1, 1], [], []>} : vector<8x128xbf16>, vector<128x128xbf16>, vector<8x128xf32> -> vector<8x128xf32>
    %23 = arith.addf %22, %7 : vector<8x128xf32>
    %24 = arith.truncf %23 : vector<8x128xf32> to vector<8x128xbf16>
    %25 = math.tanh %24 : vector<8x128xbf16>
    %cst_12 = arith.constant dense<0.000000e+00> : vector<8x128xf32>
    %26 = tpu.matmul %25, %4, %cst_12 {dimension_numbers = #tpu.dot_dimension_numbers<[1], [0], [0], [1], [0, 0, 1, 1], [], []>} : vector<8x128xbf16>, vector<128x128xbf16>, vector<8x128xf32> -> vector<8x128xf32>
    %27 = arith.addf %26, %10 : vector<8x128xf32>
    %cst_13 = arith.constant 2.000000e+00 : f32
    %28 = vector.broadcast %cst_13 : f32 to vector<8x128xf32>
    %29 = arith.mulf %28, %27 : vector<8x128xf32>
    %30 = arith.addf %17, %29 : vector<8x128xf32>
    %cst_14 = arith.constant 5.000000e-01 : f32
    %31 = vector.broadcast %cst_14 : f32 to vector<8x128xf32>
    %32 = arith.mulf %31, %27 : vector<8x128xf32>
    %33 = arith.addf %0, %32 : vector<8x128xf32>
    %34 = arith.truncf %33 : vector<8x128xf32> to vector<8x128xbf16>
    %cst_15 = arith.constant dense<0.000000e+00> : vector<8x128xf32>
    %35 = tpu.matmul %34, %2, %cst_15 {dimension_numbers = #tpu.dot_dimension_numbers<[1], [0], [0], [1], [0, 0, 1, 1], [], []>} : vector<8x128xbf16>, vector<128x128xbf16>, vector<8x128xf32> -> vector<8x128xf32>
    %36 = arith.addf %35, %7 : vector<8x128xf32>
    %37 = arith.truncf %36 : vector<8x128xf32> to vector<8x128xbf16>
    %38 = math.tanh %37 : vector<8x128xbf16>
    %cst_16 = arith.constant dense<0.000000e+00> : vector<8x128xf32>
    %39 = tpu.matmul %38, %4, %cst_16 {dimension_numbers = #tpu.dot_dimension_numbers<[1], [0], [0], [1], [0, 0, 1, 1], [], []>} : vector<8x128xbf16>, vector<128x128xbf16>, vector<8x128xf32> -> vector<8x128xf32>
    %40 = arith.addf %39, %10 : vector<8x128xf32>
    %cst_17 = arith.constant 2.000000e+00 : f32
    %41 = vector.broadcast %cst_17 : f32 to vector<8x128xf32>
    %42 = arith.mulf %41, %40 : vector<8x128xf32>
    %43 = arith.addf %30, %42 : vector<8x128xf32>
    %cst_18 = arith.constant 1.000000e+00 : f32
    %44 = vector.broadcast %cst_18 : f32 to vector<8x128xf32>
    %45 = arith.mulf %44, %40 : vector<8x128xf32>
    %46 = arith.addf %0, %45 : vector<8x128xf32>
    %47 = arith.truncf %46 : vector<8x128xf32> to vector<8x128xbf16>
    %cst_19 = arith.constant dense<0.000000e+00> : vector<8x128xf32>
    %48 = tpu.matmul %47, %2, %cst_19 {dimension_numbers = #tpu.dot_dimension_numbers<[1], [0], [0], [1], [0, 0, 1, 1], [], []>} : vector<8x128xbf16>, vector<128x128xbf16>, vector<8x128xf32> -> vector<8x128xf32>
    %49 = arith.addf %48, %7 : vector<8x128xf32>
    %50 = arith.truncf %49 : vector<8x128xf32> to vector<8x128xbf16>
    %51 = math.tanh %50 : vector<8x128xbf16>
    %cst_20 = arith.constant dense<0.000000e+00> : vector<8x128xf32>
    %52 = tpu.matmul %51, %4, %cst_20 {dimension_numbers = #tpu.dot_dimension_numbers<[1], [0], [0], [1], [0, 0, 1, 1], [], []>} : vector<8x128xbf16>, vector<128x128xbf16>, vector<8x128xf32> -> vector<8x128xf32>
    %53 = arith.addf %52, %10 : vector<8x128xf32>
    %54 = arith.addf %43, %53 : vector<8x128xf32>
    %cst_21 = arith.constant 0.166666672 : f32
    %55 = vector.broadcast %cst_21 : f32 to vector<8x128xf32>
    %56 = arith.mulf %55, %54 : vector<8x128xf32>
    %57 = arith.addf %0, %56 : vector<8x128xf32>
    %c1_i32 = arith.constant 1 : i32
    %58 = arith.truncf %57 : vector<8x128xf32> to vector<8x128xbf16>
    %cst_22 = arith.constant dense<0.000000e+00> : vector<8x128xf32>
    %59 = tpu.matmul %58, %2, %cst_22 {dimension_numbers = #tpu.dot_dimension_numbers<[1], [0], [0], [1], [0, 0, 1, 1], [], []>} : vector<8x128xbf16>, vector<128x128xbf16>, vector<8x128xf32> -> vector<8x128xf32>
    %60 = arith.addf %59, %7 : vector<8x128xf32>
    %61 = arith.truncf %60 : vector<8x128xf32> to vector<8x128xbf16>
    %62 = math.tanh %61 : vector<8x128xbf16>
    %cst_23 = arith.constant dense<0.000000e+00> : vector<8x128xf32>
    %63 = tpu.matmul %62, %4, %cst_23 {dimension_numbers = #tpu.dot_dimension_numbers<[1], [0], [0], [1], [0, 0, 1, 1], [], []>} : vector<8x128xbf16>, vector<128x128xbf16>, vector<8x128xf32> -> vector<8x128xf32>
    %64 = arith.addf %63, %10 : vector<8x128xf32>
    %cst_24 = arith.constant 5.000000e-01 : f32
    %65 = vector.broadcast %cst_24 : f32 to vector<8x128xf32>
    %66 = arith.mulf %65, %64 : vector<8x128xf32>
    %67 = arith.addf %57, %66 : vector<8x128xf32>
    %68 = arith.truncf %67 : vector<8x128xf32> to vector<8x128xbf16>
    %cst_25 = arith.constant dense<0.000000e+00> : vector<8x128xf32>
    %69 = tpu.matmul %68, %2, %cst_25 {dimension_numbers = #tpu.dot_dimension_numbers<[1], [0], [0], [1], [0, 0, 1, 1], [], []>} : vector<8x128xbf16>, vector<128x128xbf16>, vector<8x128xf32> -> vector<8x128xf32>
    %70 = arith.addf %69, %7 : vector<8x128xf32>
    %71 = arith.truncf %70 : vector<8x128xf32> to vector<8x128xbf16>
    %72 = math.tanh %71 : vector<8x128xbf16>
    %cst_26 = arith.constant dense<0.000000e+00> : vector<8x128xf32>
    %73 = tpu.matmul %72, %4, %cst_26 {dimension_numbers = #tpu.dot_dimension_numbers<[1], [0], [0], [1], [0, 0, 1, 1], [], []>} : vector<8x128xbf16>, vector<128x128xbf16>, vector<8x128xf32> -> vector<8x128xf32>
    %74 = arith.addf %73, %10 : vector<8x128xf32>
    %cst_27 = arith.constant 2.000000e+00 : f32
    %75 = vector.broadcast %cst_27 : f32 to vector<8x128xf32>
    %76 = arith.mulf %75, %74 : vector<8x128xf32>
    %77 = arith.addf %64, %76 : vector<8x128xf32>
    %cst_28 = arith.constant 5.000000e-01 : f32
    %78 = vector.broadcast %cst_28 : f32 to vector<8x128xf32>
    %79 = arith.mulf %78, %74 : vector<8x128xf32>
    %80 = arith.addf %57, %79 : vector<8x128xf32>
    %81 = arith.truncf %80 : vector<8x128xf32> to vector<8x128xbf16>
    %cst_29 = arith.constant dense<0.000000e+00> : vector<8x128xf32>
    %82 = tpu.matmul %81, %2, %cst_29 {dimension_numbers = #tpu.dot_dimension_numbers<[1], [0], [0], [1], [0, 0, 1, 1], [], []>} : vector<8x128xbf16>, vector<128x128xbf16>, vector<8x128xf32> -> vector<8x128xf32>
    %83 = arith.addf %82, %7 : vector<8x128xf32>
    %84 = arith.truncf %83 : vector<8x128xf32> to vector<8x128xbf16>
    %85 = math.tanh %84 : vector<8x128xbf16>
    %cst_30 = arith.constant dense<0.000000e+00> : vector<8x128xf32>
    %86 = tpu.matmul %85, %4, %cst_30 {dimension_numbers = #tpu.dot_dimension_numbers<[1], [0], [0], [1], [0, 0, 1, 1], [], []>} : vector<8x128xbf16>, vector<128x128xbf16>, vector<8x128xf32> -> vector<8x128xf32>
    %87 = arith.addf %86, %10 : vector<8x128xf32>
    %cst_31 = arith.constant 2.000000e+00 : f32
    %88 = vector.broadcast %cst_31 : f32 to vector<8x128xf32>
    %89 = arith.mulf %88, %87 : vector<8x128xf32>
    %90 = arith.addf %77, %89 : vector<8x128xf32>
    %cst_32 = arith.constant 1.000000e+00 : f32
    %91 = vector.broadcast %cst_32 : f32 to vector<8x128xf32>
    %92 = arith.mulf %91, %87 : vector<8x128xf32>
    %93 = arith.addf %57, %92 : vector<8x128xf32>
    %94 = arith.truncf %93 : vector<8x128xf32> to vector<8x128xbf16>
    %cst_33 = arith.constant dense<0.000000e+00> : vector<8x128xf32>
    %95 = tpu.matmul %94, %2, %cst_33 {dimension_numbers = #tpu.dot_dimension_numbers<[1], [0], [0], [1], [0, 0, 1, 1], [], []>} : vector<8x128xbf16>, vector<128x128xbf16>, vector<8x128xf32> -> vector<8x128xf32>
    %96 = arith.addf %95, %7 : vector<8x128xf32>
    %97 = arith.truncf %96 : vector<8x128xf32> to vector<8x128xbf16>
    %98 = math.tanh %97 : vector<8x128xbf16>
    %cst_34 = arith.constant dense<0.000000e+00> : vector<8x128xf32>
    %99 = tpu.matmul %98, %4, %cst_34 {dimension_numbers = #tpu.dot_dimension_numbers<[1], [0], [0], [1], [0, 0, 1, 1], [], []>} : vector<8x128xbf16>, vector<128x128xbf16>, vector<8x128xf32> -> vector<8x128xf32>
    %100 = arith.addf %99, %10 : vector<8x128xf32>
    %101 = arith.addf %90, %100 : vector<8x128xf32>
    %cst_35 = arith.constant 0.166666672 : f32
    %102 = vector.broadcast %cst_35 : f32 to vector<8x128xf32>
    %103 = arith.mulf %102, %101 : vector<8x128xf32>
    %104 = arith.addf %57, %103 : vector<8x128xf32>
    %c0_36 = arith.constant 0 : index
    %c0_37 = arith.constant 0 : index
    %105 = vector.load %arg6[%c0_36, %c0_37] : memref<8x128xf32, #tpu.memory_space<vmem>>, vector<8x128xf32>
    tpu.vector_store %arg6[%c0_36, %c0_37], %104 {strides = array<i32>} : memref<8x128xf32, #tpu.memory_space<vmem>>, vector<8x128xf32>,
    return
  }
  func.func @transform_0(%arg0: i32) -> (i32, i32) {
    %c0_i32 = arith.constant 0 : i32
    %c0_i32_0 = arith.constant 0 : i32
    return %arg0, %c0_i32 : i32, i32
  }
  func.func @transform_1(%arg0: i32) -> (i32, i32) {
    %c0_i32 = arith.constant 0 : i32
    %c0_i32_0 = arith.constant 0 : i32
    %c0_i32_1 = arith.constant 0 : i32
    return %c0_i32, %c0_i32_0 : i32, i32
  }
  func.func @transform_2(%arg0: i32) -> (i32, i32) {
    %c0_i32 = arith.constant 0 : i32
    %c0_i32_0 = arith.constant 0 : i32
    %c0_i32_1 = arith.constant 0 : i32
    return %c0_i32, %c0_i32_0 : i32, i32
  }
  func.func @transform_3(%arg0: i32) -> (i32, i32) {
    %c0_i32 = arith.constant 0 : i32
    %c0_i32_0 = arith.constant 0 : i32
    %c0_i32_1 = arith.constant 0 : i32
    return %c0_i32, %c0_i32_0 : i32, i32
  }
  func.func @transform_4(%arg0: i32) -> (i32, i32) {
    %c0_i32 = arith.constant 0 : i32
    %c0_i32_0 = arith.constant 0 : i32
    %c0_i32_1 = arith.constant 0 : i32
    return %c0_i32, %c0_i32_0 : i32, i32
  }
  func.func @transform_5(%arg0: i32) -> (i32, i32) {
    %c0_i32 = arith.constant 0 : i32
    %c0_i32_0 = arith.constant 0 : i32
    return %arg0, %c0_i32 : i32, i32
  }
}

</mosaic_0001>

<bundles_post_ra>
// kernel: tpu_custom_call.1
= control target key start
LH: loop header
LB: loop body
LE: loop exit
PB: predicated region body
PF: predicated region fallthrough
CT: control target
= control target key end

     0   :  { %10 = vsyncpa [#allocation3], 0  ;;  %s794_s0 = inlined_call_operand.hbm [shape: f32[8,128], index: 0, kind: input, shape index: {}]   ;;  %s795_s1 = inlined_call_operand.hbm [shape: f32[128,128], index: 1, kind: input, shape index: {}]   ;;  %s796_s2 = inlined_call_operand.vmem [shape: f32[1,128], index: 2, kind: input, shape index: {}]   ;;  %s797_s3 = inlined_call_operand.hbm [shape: f32[128,128], index: 3, kind: input, shape index: {}]   ;;  %s798_s4 = inlined_call_operand.vmem [shape: f32[1,128], index: 4, kind: input, shape index: {}]   ;;  %s799_s5 = inlined_call_operand.hbm [shape: f32[8,128], index: 5, kind: output, shape index: {}]  }
   0x1   :  { %11 = vsyncpa [#allocation6], 0  ;;  %s28_s20 = sshll.u32 %s795_s1, 4  ;;  %s29_s20 = int_to_ptr.hbm [resolvable:$true] %s28_s20 }
   0x2   :  { %12 = vsyncpa [#allocation4], 0  ;;  %s540_s21 = smov [#allocation5]   ;;  %s18_s25 = sshll.u32 %s794_s0, 4  ;;  %s19_s25 = int_to_ptr.hbm [resolvable:$true] %s18_s25 }
   0x3   :  { %s30_s22 = sshll.u32 %s540_s21, 4  ;;  %s541_s26 = smov 128   ;;  %s31_s22 = int_to_ptr.vmem [resolvable:$true] %s30_s22 }
   0x4   :  { %s542_s27 = smov 8   ;;  %s543_s28 = smov [#allocation2]  }
   0x5   :  { %36 = dma.hbm_to_vmem [thread:$0]  %s29_s20, 2048, %s31_s22, [#allocation6], %s541_s26, %s541_s26, %s542_s27  }
   0x6   :  { %s20_s29 = sshll.u32 %s543_s28, 4  ;;  %s43_s7 = sshll.u32 %s797_s3, 4  ;;  %s21_s29 = int_to_ptr.vmem [resolvable:$true] %s20_s29  ;;  %s44_s7 = int_to_ptr.hbm [resolvable:$true] %s43_s7 }
   0x7   :  { %23 = dma.hbm_to_vmem [thread:$0]  %s19_s25, 128, %s21_s29, [#allocation3]  }
   0x8   :  { %s544_s1 = smov [#allocation7]  }
   0x9   :  { %s45_s8 = sshll.u32 %s544_s1, 4  ;;  %s46_s8 = int_to_ptr.vmem [resolvable:$true] %s45_s8 }
   0xa   :  { %51 = dma.hbm_to_vmem [thread:$0]  %s44_s7, 2048, %s46_s8, [#allocation6], %s541_s26, %s541_s26, %s542_s27  }
   0xb   :  { %534 = dma.done.wait [#allocation3], 128  }
   0xc   :  { %535 = vsyncadd [#allocation3], 4294967168 }
   0xd   :  { %536 = dma.done.wait [#allocation6], 4096  }
   0xe   :  { %537 = vsyncadd [#allocation6], 4294963200  ;;  %v81_v0 = vld [vmem:[#allocation5 + $0x70] sm:$0xff]  ;;  %v82_v1 = vld [vmem:[#allocation5 + $0x78] sm:$0xff]  ;;  %s403_s13 = sshll.u32 %s799_s5, 4  ;;  %s404_s13 = int_to_ptr.hbm [resolvable:$true] %s403_s13 }
   0xf   :  { %v79_v2 = vld [vmem:[#allocation5 + $0x60] sm:$0xff]  ;;  %v585_v3 = vpack.c.bf16 %v82_v1, %v81_v0  ;;  %v80_v4 = vld [vmem:[#allocation5 + $0x68] sm:$0xff]  ;;  %v77_v6 = vld [vmem:[#allocation5 + $0x50] sm:$0xff] }
  0x10   :  { %v588_v5 = vpack.c.bf16 %v80_v4, %v79_v2  ;;  %v78_v7 = vld [vmem:[#allocation5 + $0x58] sm:$0xff]  ;;  %v105_v8 = vld [vmem:[#allocation7 + $0x70] sm:$0xff]  ;;  %v103_v10 = vld [vmem:[#allocation7 + $0x60] sm:$0xff] }
  0x11   :  { %124 = vmatpush.bf16.msra.mxu0 %v585_v3  ;;  %157 = vmatpush.bf16.msra.mxu2 %v585_v3  ;;  %v106_v9 = vld [vmem:[#allocation7 + $0x78] sm:$0xff]  ;;  %v104_v11 = vld [vmem:[#allocation7 + $0x68] sm:$0xff]  ;;  %v592_v12 = vpack.c.bf16 %v78_v7, %v77_v6  ;;  %v75_v14 = vld [vmem:[#allocation5 + $0x40] sm:$0xff] }
  0x12   :  { %v594_v13 = vpack.c.bf16 %v106_v9, %v105_v8  ;;  %v76_v15 = vld [vmem:[#allocation5 + $0x48] sm:$0xff]  ;;  %v598_v16 = vpack.c.bf16 %v104_v11, %v103_v10  ;;  %v101_v17 = vld [vmem:[#allocation7 + $0x50] sm:$0xff]  ;;  %v102_v18 = vld [vmem:[#allocation7 + $0x58] sm:$0xff] }
  0x13   :  { %v602_v19 = vpack.c.bf16 %v76_v15, %v75_v14  ;;  %v73_v20 = vld [vmem:[#allocation5 + $0x30] sm:$0xff]  ;;  %v74_v21 = vld [vmem:[#allocation5 + $0x38] sm:$0xff]  ;;  %v606_v22 = vpack.c.bf16 %v102_v18, %v101_v17  ;;  %v99_v23 = vld [vmem:[#allocation7 + $0x40] sm:$0xff] }
  0x14   :  { %141 = vmatpush.bf16.msra.mxu1 %v594_v13  ;;  %174 = vmatpush.bf16.msra.mxu3 %v594_v13  ;;  %v100_v24 = vld [vmem:[#allocation7 + $0x48] sm:$0xff]  ;;  %v610_v25 = vpack.c.bf16 %v74_v21, %v73_v20  ;;  %v71_v26 = vld [vmem:[#allocation5 + $0x20] sm:$0xff]  ;;  %v69_v30 = vld [vmem:[#allocation5 + $0x10] sm:$0xff] }
  0x15   :  { %125 = vmatpush.bf16.msra.mxu0 %v588_v5  ;;  %158 = vmatpush.bf16.msra.mxu2 %v588_v5  ;;  %v72_v27 = vld [vmem:[#allocation5 + $0x28] sm:$0xff]  ;;  %v614_v28 = vpack.c.bf16 %v100_v24, %v99_v23  ;;  %v70_v31 = vld [vmem:[#allocation5 + $0x18] sm:$0xff]  ;;  %v67_v33 = vld [vmem:[#allocation5] sm:$0xff] }
  0x16   :  { %v618_v29 = vpack.c.bf16 %v72_v27, %v71_v26  ;;  %v624_v32 = vpack.c.bf16 %v70_v31, %v69_v30  ;;  %v68_v34 = vld [vmem:[#allocation5 + $0x8] sm:$0xff]  ;;  %v630_v36 = vld [vmem:[#allocation2] sm:$0xff]  ;;  %v97_v38 = vld [vmem:[#allocation7 + $0x30] sm:$0xff] }
  0x17   :  { %v628_v35 = vpack.c.bf16 %v68_v34, %v67_v33  ;;  %v123_v37 = vpack.c.bf16 %v630_v36, %v630_v36  ;;  %v98_v39 = vld [vmem:[#allocation7 + $0x38] sm:$0xff]  ;;  %v95_v41 = vld [vmem:[#allocation7 + $0x20] sm:$0xff]  ;;  %v96_v42 = vld [vmem:[#allocation7 + $0x28] sm:$0xff] }
  0x18   :  { %142 = vmatpush.bf16.msra.mxu1 %v598_v16  ;;  %175 = vmatpush.bf16.msra.mxu3 %v598_v16  ;;  %v661_v40 = vpack.c.bf16 %v98_v39, %v97_v38  ;;  %v665_v43 = vpack.c.bf16 %v96_v42, %v95_v41  ;;  %v93_v44 = vld [vmem:[#allocation7 + $0x10] sm:$0xff]  ;;  %v94_v45 = vld [vmem:[#allocation7 + $0x18] sm:$0xff]  ;;  %v91_v47 = vld [vmem:[#allocation7] sm:$0xff] }
  0x19   :  { %126 = vmatpush.bf16.msra.mxu0 %v592_v12  ;;  %159 = vmatpush.bf16.msra.mxu2 %v592_v12  ;;  %v669_v46 = vpack.c.bf16 %v94_v45, %v93_v44  ;;  %v92_v48 = vld [vmem:[#allocation7 + $0x8] sm:$0xff]  ;;  %v688_v50 = vld [vmem:[%s796_s2] ss:$0 sm:$0xff] }
  0x1a   :  { %v672_v49 = vpack.c.bf16 %v92_v48, %v91_v47  ;;  %v710_v58 = vld [vmem:[%s798_s4] ss:$0 sm:$0xff]  ;;  %s545_s4 = smov [#allocation8]  }
  0x1b   :  { %s401_s10 = sshll.u32 %s545_s4, 4  ;;  %s402_s10 = int_to_ptr.vmem [resolvable:$true] %s401_s10 }
  0x1c   :  { %143 = vmatpush.bf16.msra.mxu1 %v606_v22  ;;  %176 = vmatpush.bf16.msra.mxu3 %v606_v22 }
  0x1d   :  { %127 = vmatpush.bf16.msra.mxu0 %v602_v19  ;;  %160 = vmatpush.bf16.msra.mxu2 %v602_v19 }
  0x20   :  { %144 = vmatpush.bf16.msra.mxu1 %v614_v28  ;;  %177 = vmatpush.bf16.msra.mxu3 %v614_v28 }
  0x21   :  { %128 = vmatpush.bf16.msra.mxu0 %v610_v25  ;;  %161 = vmatpush.bf16.msra.mxu2 %v610_v25 }
  0x24   :  { %145 = vmatpush.bf16.msra.mxu1 %v661_v40  ;;  %178 = vmatpush.bf16.msra.mxu3 %v661_v40 }
  0x25   :  { %129 = vmatpush.bf16.msra.mxu0 %v618_v29  ;;  %162 = vmatpush.bf16.msra.mxu2 %v618_v29 }
  0x28   :  { %146 = vmatpush.bf16.msra.mxu1 %v665_v43  ;;  %179 = vmatpush.bf16.msra.mxu3 %v665_v43 }
  0x29   :  { %130 = vmatpush.bf16.msra.mxu0 %v624_v32  ;;  %163 = vmatpush.bf16.msra.mxu2 %v624_v32 }
  0x2c   :  { %147 = vmatpush.bf16.msra.mxu1 %v669_v46  ;;  %180 = vmatpush.bf16.msra.mxu3 %v669_v46 }
  0x2d   :  { %131 = vmatpush.bf16.msra.mxu0 %v628_v35  ;;  %164 = vmatpush.bf16.msra.mxu2 %v628_v35 }
  0x30   :  { %132 = vmatmul.bf16.vlgmr.msra.gmra.mxu0 %v123_v37  ;;  %148 = vmatpush.bf16.msra.mxu1 %v672_v49 }
  0x31   :  { %192 = vmatpush.bf16.msrb.mxu0 %v585_v3  ;;  %226 = vmatpush.bf16.msrb.mxu2 %v585_v3 }
  0x32   :  { %181 = vmatpush.bf16.msra.mxu3 %v672_v49 }
  0x34   :  { %209 = vmatpush.bf16.msrb.mxu1 %v594_v13 }
  0x35   :  { %193 = vmatpush.bf16.msrb.mxu0 %v588_v5  ;;  %227 = vmatpush.bf16.msrb.mxu2 %v588_v5 }
  0x36   :  { %243 = vmatpush.bf16.msrb.mxu3 %v594_v13 }
  0x38   :  { %210 = vmatpush.bf16.msrb.mxu1 %v598_v16 }
  0x39   :  { %194 = vmatpush.bf16.msrb.mxu0 %v592_v12  ;;  %228 = vmatpush.bf16.msrb.mxu2 %v592_v12 }
  0x3a   :  { %244 = vmatpush.bf16.msrb.mxu3 %v598_v16 }
  0x3c   :  { %211 = vmatpush.bf16.msrb.mxu1 %v606_v22 }
  0x3d   :  { %195 = vmatpush.bf16.msrb.mxu0 %v602_v19  ;;  %229 = vmatpush.bf16.msrb.mxu2 %v602_v19 }
  0x3e   :  { %245 = vmatpush.bf16.msrb.mxu3 %v606_v22 }
  0x40   :  { %212 = vmatpush.bf16.msrb.mxu1 %v614_v28 }
  0x41   :  { %196 = vmatpush.bf16.msrb.mxu0 %v610_v25  ;;  %230 = vmatpush.bf16.msrb.mxu2 %v610_v25 }
  0x42   :  { %246 = vmatpush.bf16.msrb.mxu3 %v614_v28 }
  0x44   :  { %213 = vmatpush.bf16.msrb.mxu1 %v661_v40 }
  0x45   :  { %197 = vmatpush.bf16.msrb.mxu0 %v618_v29  ;;  %231 = vmatpush.bf16.msrb.mxu2 %v618_v29 }
  0x46   :  { %247 = vmatpush.bf16.msrb.mxu3 %v661_v40 }
  0x48   :  { %214 = vmatpush.bf16.msrb.mxu1 %v665_v43 }
  0x49   :  { %198 = vmatpush.bf16.msrb.mxu0 %v624_v32  ;;  %232 = vmatpush.bf16.msrb.mxu2 %v624_v32 }
  0x4a   :  { %248 = vmatpush.bf16.msrb.mxu3 %v665_v43 }
  0x4c   :  { %215 = vmatpush.bf16.msrb.mxu1 %v669_v46 }
  0x4d   :  { %199 = vmatpush.bf16.msrb.mxu0 %v628_v35  ;;  %233 = vmatpush.bf16.msrb.mxu2 %v628_v35 }
  0x4e   :  { %249 = vmatpush.bf16.msrb.mxu3 %v669_v46 }
  0x50   :  { %216 = vmatpush.bf16.msrb.mxu1 %v672_v49 }
  0x51   :  { %260 = vmatpush.bf16.msra.mxu0 %v585_v3 }
  0x52   :  { %250 = vmatpush.bf16.msrb.mxu3 %v672_v49 }
  0x55   :  { %261 = vmatpush.bf16.msra.mxu0 %v588_v5 }
  0x59   :  { %262 = vmatpush.bf16.msra.mxu0 %v592_v12 }
  0x5d   :  { %263 = vmatpush.bf16.msra.mxu0 %v602_v19 }
  0x61   :  { %264 = vmatpush.bf16.msra.mxu0 %v610_v25 }
  0x65   :  { %265 = vmatpush.bf16.msra.mxu0 %v618_v29 }
  0x69   :  { %266 = vmatpush.bf16.msra.mxu0 %v624_v32 }
  0x6d   :  { %267 = vmatpush.bf16.msra.mxu0 %v628_v35 }
  0xad   :  { %v133_v51 = vpop.f32.mrf.mxu0 }
  0xae   :  { %v134_v52 = vadd.f32 %v688_v50, %v133_v51 }
  0xb0   :  { %v137_v53 = vpack.c.bf16 %v134_v52, %v134_v52 }
  0xb2   :  { %v138_v54 = vunpack.c.l.bf16 %v137_v53 }
  0xb4   :  { %422 = vtanh.f32 %v138_v54 }
  0xb5   :  { %v135_v55 = vpop.f32.mrf.mxu0 }
  0xba   :  { %v423_v56 = vpop.eup %422 }
  0xbb   :  { %v140_v57 = vpack.c.bf16 %v423_v56, %v423_v56 }
  0xbd   :  { %149 = vmatmul.bf16.vlgmr.msra.gmra.mxu1 %v140_v57 }
  0xbe   :  { %277 = vmatpush.bf16.msra.mxu1 %v594_v13 }
  0xc2   :  { %278 = vmatpush.bf16.msra.mxu1 %v598_v16 }
  0xc6   :  { %279 = vmatpush.bf16.msra.mxu1 %v606_v22 }
  0xca   :  { %280 = vmatpush.bf16.msra.mxu1 %v614_v28 }
  0xce   :  { %281 = vmatpush.bf16.msra.mxu1 %v661_v40 }
  0xd2   :  { %282 = vmatpush.bf16.msra.mxu1 %v665_v43 }
  0xd6   :  { %283 = vmatpush.bf16.msra.mxu1 %v669_v46 }
  0xda   :  { %284 = vmatpush.bf16.msra.mxu1 %v672_v49 }
 0x13a   :  { %v150_v59 = vpop.f32.mrf.mxu1 }
 0x13b   :  { %v713_v60 = vadd.f32 %v710_v58, %v150_v59 }
 0x13d   :  { %v154_v61 = vmul.f32 0.5, %v713_v60 }
 0x13f   :  { %v155_v62 = vadd.f32 %v154_v61, %v630_v36 }
 0x141   :  { %v156_v63 = vpack.c.bf16 %v155_v62, %v155_v62 }
 0x142   :  { %v152_v0 = vpop.f32.mrf.mxu1 }
 0x143   :  { %165 = vmatmul.bf16.vlgmr.msra.gmra.mxu2 %v156_v63 }
 0x144   :  { %293 = vmatpush.bf16.msra.mxu2 %v585_v3 }
 0x148   :  { %294 = vmatpush.bf16.msra.mxu2 %v588_v5 }
 0x14c   :  { %295 = vmatpush.bf16.msra.mxu2 %v592_v12 }
 0x150   :  { %296 = vmatpush.bf16.msra.mxu2 %v602_v19 }
 0x154   :  { %297 = vmatpush.bf16.msra.mxu2 %v610_v25 }
 0x158   :  { %298 = vmatpush.bf16.msra.mxu2 %v618_v29 }
 0x15c   :  { %299 = vmatpush.bf16.msra.mxu2 %v624_v32 }
 0x160   :  { %300 = vmatpush.bf16.msra.mxu2 %v628_v35 }
 0x1c6   :  { %v166_v1 = vpop.f32.mrf.mxu2 }
 0x1c7   :  { %v167_v2 = vadd.f32 %v688_v50, %v166_v1 }
 0x1c9   :  { %v170_v4 = vpack.c.bf16 %v167_v2, %v167_v2 }
 0x1cb   :  { %v171_v6 = vunpack.c.l.bf16 %v170_v4 }
 0x1cd   :  { %424 = vtanh.f32 %v171_v6 }
 0x1ce   :  { %v168_v7 = vpop.f32.mrf.mxu2 }
 0x1d3   :  { %v425_v8 = vpop.eup %424 }
 0x1d4   :  { %v173_v9 = vpack.c.bf16 %v425_v8, %v425_v8 }
 0x1d6   :  { %182 = vmatmul.bf16.vlgmr.msra.gmra.mxu3 %v173_v9 }
 0x1d7   :  { %310 = vmatpush.bf16.msra.mxu3 %v594_v13 }
 0x1db   :  { %311 = vmatpush.bf16.msra.mxu3 %v598_v16 }
 0x1df   :  { %312 = vmatpush.bf16.msra.mxu3 %v606_v22 }
 0x1e3   :  { %313 = vmatpush.bf16.msra.mxu3 %v614_v28 }
 0x1e7   :  { %314 = vmatpush.bf16.msra.mxu3 %v661_v40 }
 0x1eb   :  { %315 = vmatpush.bf16.msra.mxu3 %v665_v43 }
 0x1ef   :  { %316 = vmatpush.bf16.msra.mxu3 %v669_v46 }
 0x1f3   :  { %317 = vmatpush.bf16.msra.mxu3 %v672_v49 }
 0x259   :  { %v183_v10 = vpop.f32.mrf.mxu3 }
 0x25a   :  { %v184_v11 = vadd.f32 %v710_v58, %v183_v10 }
 0x25c   :  { %v189_v14 = vmul.f32 0.5, %v184_v11  ;;  %v187_v31 = vmul.f32 2.0, %v184_v11 }
 0x25e   :  { %v190_v15 = vadd.f32 %v189_v14, %v630_v36  ;;  %v188_v37 = vadd.f32 %v187_v31, %v713_v60 }
 0x260   :  { %v191_v17 = vpack.c.bf16 %v190_v15, %v190_v15 }
 0x261   :  { %v185_v18 = vpop.f32.mrf.mxu3 }
 0x262   :  { %200 = vmatmul.bf16.vlgmr.msrb.gmra.mxu0 %v191_v17 }
 0x263   :  { %328 = vmatpush.bf16.msrb.mxu0 %v585_v3 }
 0x267   :  { %329 = vmatpush.bf16.msrb.mxu0 %v588_v5 }
 0x26b   :  { %330 = vmatpush.bf16.msrb.mxu0 %v592_v12 }
 0x26f   :  { %331 = vmatpush.bf16.msrb.mxu0 %v602_v19 }
 0x273   :  { %332 = vmatpush.bf16.msrb.mxu0 %v610_v25 }
 0x277   :  { %333 = vmatpush.bf16.msrb.mxu0 %v618_v29 }
 0x27b   :  { %334 = vmatpush.bf16.msrb.mxu0 %v624_v32 }
 0x27f   :  { %335 = vmatpush.bf16.msrb.mxu0 %v628_v35 }
 0x2df   :  { %v201_v20 = vpop.f32.mrf.mxu0 }
 0x2e0   :  { %v202_v21 = vadd.f32 %v688_v50, %v201_v20 }
 0x2e2   :  { %v205_v23 = vpack.c.bf16 %v202_v21, %v202_v21 }
 0x2e4   :  { %v206_v24 = vunpack.c.l.bf16 %v205_v23 }
 0x2e6   :  { %426 = vtanh.f32 %v206_v24 }
 0x2e7   :  { %v203_v26 = vpop.f32.mrf.mxu0 }
 0x2ec   :  { %v427_v27 = vpop.eup %426 }
 0x2ed   :  { %v208_v30 = vpack.c.bf16 %v427_v27, %v427_v27 }
 0x2ef   :  { %217 = vmatmul.bf16.vlgmr.msrb.gmra.mxu1 %v208_v30 }
 0x2f0   :  { %345 = vmatpush.bf16.msrb.mxu1 %v594_v13 }
 0x2f4   :  { %346 = vmatpush.bf16.msrb.mxu1 %v598_v16 }
 0x2f8   :  { %347 = vmatpush.bf16.msrb.mxu1 %v606_v22 }
 0x2fc   :  { %348 = vmatpush.bf16.msrb.mxu1 %v614_v28 }
 0x300   :  { %349 = vmatpush.bf16.msrb.mxu1 %v661_v40 }
 0x304   :  { %350 = vmatpush.bf16.msrb.mxu1 %v665_v43 }
 0x308   :  { %351 = vmatpush.bf16.msrb.mxu1 %v669_v46 }
 0x30c   :  { %352 = vmatpush.bf16.msrb.mxu1 %v672_v49 }
 0x36c   :  { %v218_v33 = vpop.f32.mrf.mxu1 }
 0x36d   :  { %v219_v34 = vadd.f32 %v710_v58, %v218_v33 }
 0x36f   :  { %v222_v38 = vmul.f32 2.0, %v219_v34  ;;  %v224_v39 = vadd.f32 %v219_v34, %v630_v36 }
 0x371   :  { %v225_v41 = vpack.c.bf16 %v224_v39, %v224_v39  ;;  %v223_v42 = vadd.f32 %v222_v38, %v188_v37 }
 0x373   :  { %234 = vmatmul.bf16.vlgmr.msrb.gmra.mxu2 %v225_v41 }
 0x374   :  { %v220_v44 = vpop.f32.mrf.mxu1  ;;  %362 = vmatpush.bf16.msrb.mxu2 %v585_v3 }
 0x378   :  { %363 = vmatpush.bf16.msrb.mxu2 %v588_v5 }
 0x37c   :  { %364 = vmatpush.bf16.msrb.mxu2 %v592_v12 }
 0x380   :  { %365 = vmatpush.bf16.msrb.mxu2 %v602_v19 }
 0x384   :  { %366 = vmatpush.bf16.msrb.mxu2 %v610_v25 }
 0x388   :  { %367 = vmatpush.bf16.msrb.mxu2 %v618_v29 }
 0x38c   :  { %368 = vmatpush.bf16.msrb.mxu2 %v624_v32 }
 0x390   :  { %369 = vmatpush.bf16.msrb.mxu2 %v628_v35 }
 0x3f6   :  { %v235_v45 = vpop.f32.mrf.mxu2 }
 0x3f7   :  { %v236_v47 = vadd.f32 %v688_v50, %v235_v45 }
 0x3f9   :  { %v239_v48 = vpack.c.bf16 %v236_v47, %v236_v47 }
 0x3fb   :  { %v240_v51 = vunpack.c.l.bf16 %v239_v48 }
 0x3fd   :  { %428 = vtanh.f32 %v240_v51 }
 0x3fe   :  { %v237_v3 = vpop.f32.mrf.mxu2 }
 0x403   :  { %v429_v5 = vpop.eup %428 }
 0x404   :  { %v242_v52 = vpack.c.bf16 %v429_v5, %v429_v5 }
 0x406   :  { %251 = vmatmul.bf16.vlgmr.msrb.gmra.mxu3 %v242_v52 }
 0x407   :  { %379 = vmatpush.bf16.msrb.mxu3 %v594_v13 }
 0x40b   :  { %380 = vmatpush.bf16.msrb.mxu3 %v598_v16 }
 0x40f   :  { %381 = vmatpush.bf16.msrb.mxu3 %v606_v22 }
 0x413   :  { %382 = vmatpush.bf16.msrb.mxu3 %v614_v28 }
 0x417   :  { %383 = vmatpush.bf16.msrb.mxu3 %v661_v40 }
 0x41b   :  { %384 = vmatpush.bf16.msrb.mxu3 %v665_v43 }
 0x41f   :  { %385 = vmatpush.bf16.msrb.mxu3 %v669_v46 }
 0x423   :  { %386 = vmatpush.bf16.msrb.mxu3 %v672_v49 }
 0x489   :  { %v252_v12 = vpop.f32.mrf.mxu3 }
 0x48a   :  { %v253_v19 = vadd.f32 %v710_v58, %v252_v12 }
 0x48c   :  { %v256_v25 = vadd.f32 %v253_v19, %v223_v42 }
 0x48e   :  { %v257_v29 = vmul.f32 0.16666667, %v256_v25 }
 0x490   :  { %v775_v13 = vadd.f32 %v257_v29, %v630_v36 }
 0x491   :  { %v254_v16 = vpop.f32.mrf.mxu3 }
 0x492   :  { %v259_v22 = vpack.c.bf16 %v775_v13, %v775_v13 }
 0x494   :  { %268 = vmatmul.bf16.vlgmr.msra.gmra.mxu0 %v259_v22 }
 0x511   :  { %v269_v28 = vpop.f32.mrf.mxu0 }
 0x512   :  { %v270_v32 = vadd.f32 %v688_v50, %v269_v28 }
 0x514   :  { %v273_v35 = vpack.c.bf16 %v270_v32, %v270_v32 }
 0x516   :  { %v274_v40 = vunpack.c.l.bf16 %v273_v35 }
 0x518   :  { %430 = vtanh.f32 %v274_v40 }
 0x519   :  { %v271_v43 = vpop.f32.mrf.mxu0 }
 0x51e   :  { %v431_v46 = vpop.eup %430 }
 0x51f   :  { %v276_v49 = vpack.c.bf16 %v431_v46, %v431_v46 }
 0x521   :  { %285 = vmatmul.bf16.vlgmr.msra.gmra.mxu1 %v276_v49 }
 0x59e   :  { %v286_v53 = vpop.f32.mrf.mxu1 }
 0x59f   :  { %v287_v54 = vadd.f32 %v710_v58, %v286_v53 }
 0x5a1   :  { %v290_v36 = vmul.f32 0.5, %v287_v54 }
 0x5a3   :  { %v291_v55 = vadd.f32 %v290_v36, %v775_v13 }
 0x5a5   :  { %v292_v56 = vpack.c.bf16 %v291_v55, %v291_v55 }
 0x5a6   :  { %v288_v57 = vpop.f32.mrf.mxu1 }
 0x5a7   :  { %301 = vmatmul.bf16.vlgmr.msra.gmra.mxu2 %v292_v56 }
 0x62a   :  { %v302_v59 = vpop.f32.mrf.mxu2 }
 0x62b   :  { %v303_v60 = vadd.f32 %v688_v50, %v302_v59 }
 0x62d   :  { %v306_v61 = vpack.c.bf16 %v303_v60, %v303_v60 }
 0x62f   :  { %v307_v62 = vunpack.c.l.bf16 %v306_v61 }
 0x631   :  { %432 = vtanh.f32 %v307_v62 }
 0x632   :  { %v304_v63 = vpop.f32.mrf.mxu2 }
 0x637   :  { %v433_v0 = vpop.eup %432 }
 0x638   :  { %v309_v1 = vpack.c.bf16 %v433_v0, %v433_v0 }
 0x63a   :  { %318 = vmatmul.bf16.vlgmr.msra.gmra.mxu3 %v309_v1 }
 0x6bd   :  { %v319_v2 = vpop.f32.mrf.mxu3 }
 0x6be   :  { %v320_v4 = vadd.f32 %v710_v58, %v319_v2 }
 0x6c0   :  { %v325_v6 = vmul.f32 0.5, %v320_v4  ;;  %v323_v21 = vmul.f32 2.0, %v320_v4 }
 0x6c2   :  { %v326_v7 = vadd.f32 %v325_v6, %v775_v13  ;;  %v324_v26 = vadd.f32 %v323_v21, %v287_v54 }
 0x6c4   :  { %v327_v8 = vpack.c.bf16 %v326_v7, %v326_v7 }
 0x6c5   :  { %v321_v9 = vpop.f32.mrf.mxu3 }
 0x6c6   :  { %336 = vmatmul.bf16.vlgmr.msrb.gmra.mxu0 %v327_v8 }
 0x743   :  { %v337_v10 = vpop.f32.mrf.mxu0 }
 0x744   :  { %v338_v11 = vadd.f32 %v688_v50, %v337_v10 }
 0x746   :  { %v341_v14 = vpack.c.bf16 %v338_v11, %v338_v11 }
 0x748   :  { %v342_v15 = vunpack.c.l.bf16 %v341_v14 }
 0x74a   :  { %434 = vtanh.f32 %v342_v15 }
 0x74b   :  { %v339_v17 = vpop.f32.mrf.mxu0 }
 0x750   :  { %v435_v18 = vpop.eup %434 }
 0x751   :  { %v344_v20 = vpack.c.bf16 %v435_v18, %v435_v18 }
 0x753   :  { %353 = vmatmul.bf16.vlgmr.msrb.gmra.mxu1 %v344_v20 }
 0x7d0   :  { %v354_v23 = vpop.f32.mrf.mxu1 }
 0x7d1   :  { %v355_v24 = vadd.f32 %v710_v58, %v354_v23 }
 0x7d3   :  { %v358_v27 = vmul.f32 2.0, %v355_v24  ;;  %v360_v30 = vadd.f32 %v355_v24, %v775_v13 }
 0x7d5   :  { %v361_v31 = vpack.c.bf16 %v360_v30, %v360_v30  ;;  %v359_v33 = vadd.f32 %v358_v27, %v324_v26 }
 0x7d7   :  { %370 = vmatmul.bf16.vlgmr.msrb.gmra.mxu2 %v361_v31 }
 0x7d8   :  { %v356_v34 = vpop.f32.mrf.mxu1 }
 0x85a   :  { %v371_v37 = vpop.f32.mrf.mxu2 }
 0x85b   :  { %v372_v38 = vadd.f32 %v688_v50, %v371_v37 }
 0x85d   :  { %v375_v39 = vpack.c.bf16 %v372_v38, %v372_v38 }
 0x85f   :  { %v376_v41 = vunpack.c.l.bf16 %v375_v39 }
 0x861   :  { %436 = vtanh.f32 %v376_v41 }
 0x862   :  { %v373_v42 = vpop.f32.mrf.mxu2 }
 0x867   :  { %v437_v44 = vpop.eup %436 }
 0x868   :  { %v378_v45 = vpack.c.bf16 %v437_v44, %v437_v44 }
 0x86a   :  { %387 = vmatmul.bf16.vlgmr.msrb.gmra.mxu3 %v378_v45 }
 0x8ed   :  { %v388_v47 = vpop.f32.mrf.mxu3 }
 0x8ee   :  { %v389_v48 = vadd.f32 %v710_v58, %v388_v47 }
 0x8f0   :  { %v392_v51 = vadd.f32 %v389_v48, %v359_v33 }
 0x8f2   :  { %v393_v3 = vmul.f32 0.16666667, %v392_v51 }
 0x8f4   :  { %v394_v50 = vadd.f32 %v393_v3, %v775_v13 }
 0x8f5   :  { %v390_v5 = vpop.f32.mrf.mxu3 }
 0x8f6   :  { %395 = vst [vmem:[#allocation8] sm:$0xff] %v394_v50 }
 0x8f7   :  { %406 = dma.vmem_to_hbm [thread:$0]  %s402_s10, 128, %s404_s13, [#allocation4]  }
 0x8f8   :  { %538 = dma.done.wait [#allocation4], 128  }
 0x8f9   :  { %539 = vsyncadd [#allocation4], 4294967168 }
 0x8fa   :  { %411 = vsyncpa [#allocation3], 1 }
 0x8fb   :  { %412 = vsyncpa [#allocation6], 1 }
 0x8fc   :  { %413 = vsyncpa [#allocation4], 1 }

</bundles_post_ra>
